<compile_context>
chip_gen: v7x
topology: tpu7x:2x2x1
jax: 0.10.0
libtpu: 0.0.40
codegen_flags: <defaults>
</compile_context>

<pallas_src>
import jax
import jax.numpy as jnp
from jax.experimental import pallas as pl
from jax.experimental.pallas import tpu as pltpu

BN_EPS = 1e-5
LANE = 128


def _make_discriminator_kernel(batch, hidden, out_pad, mxu_dtype):
    inv_b = 1.0 / float(batch)

    def kernel(x_ref, w1_ref, w2_ref, w3_ref, vec_ref, o_ref):
        # Packed per-feature vectors (single DMA); rows read with static slices.
        g1 = vec_ref[0:1, 0:hidden]
        be1 = vec_ref[1:2, 0:hidden]
        g2 = vec_ref[2:3, 0:hidden]
        be2 = vec_ref[3:4, 0:hidden]
        b3 = vec_ref[4:5, 0:out_pad]

        x = x_ref[...]

        def bn_relu(h, g, be):
            # One-pass batch stats (biased variance, matches torch training BN).
            mean = jnp.sum(h, axis=0, keepdims=True) * inv_b
            ex2 = jnp.sum(h * h, axis=0, keepdims=True) * inv_b
            var = jnp.maximum(ex2 - mean * mean, 0.0)
            scale = g * jax.lax.rsqrt(var + BN_EPS)
            shift = be - mean * scale
            return jnp.maximum(h * scale + shift, 0.0)

        # fc1 (bias omitted: cancels under batch-stat BN) -> bn1 -> relu
        h = jnp.dot(x.astype(mxu_dtype), w1_ref[...],
                    preferred_element_type=jnp.float32)
        h = bn_relu(h, g1, be1)

        # fc2 (bias omitted) -> bn2 -> relu
        h = jnp.dot(h.astype(mxu_dtype), w2_ref[...],
                    preferred_element_type=jnp.float32)
        h = bn_relu(h, g2, be2)

        # fc3 on the lane-dense (padded to a multiple of 128) output
        out = jnp.dot(h.astype(mxu_dtype), w3_ref[...],
                      preferred_element_type=jnp.float32)
        o_ref[...] = (out + b3).astype(o_ref.dtype)

    return kernel


def discriminator_forward(x, params, matmul_dtype=jnp.float32):
    """x: (B, input_size) f32.  params: dict of weights (see init_params).

    matmul_dtype=jnp.bfloat16 feeds bf16 operands to the MXU (v6e/v7x win);
    BN math stays f32 either way.  Default f32 preserves PyTorch precision.
    """
    x = x.astype(jnp.float32)
    B = x.shape[0]
    hidden = params["w1"].shape[1]
    n_class = params["w3"].shape[1]
    out_pad = pl.cdiv(n_class, LANE) * LANE      # lane-dense output width
    vec_w = max(hidden, out_pad)

    # Lane-dense fc3: zero-pad weight columns / bias to out_pad lanes.
    w3p = jnp.zeros((hidden, out_pad), params["w3"].dtype)
    w3p = w3p.at[:, :n_class].set(params["w3"])
    b3p = jnp.zeros((out_pad,), jnp.float32).at[:n_class].set(
        params["b3"].reshape(-1))

    # Pack all small per-feature vectors into one (8, vec_w) tile -> one DMA.
    vecs = jnp.zeros((8, vec_w), jnp.float32)
    vecs = vecs.at[0, :hidden].set(params["g1"].reshape(-1))
    vecs = vecs.at[1, :hidden].set(params["be1"].reshape(-1))
    vecs = vecs.at[2, :hidden].set(params["g2"].reshape(-1))
    vecs = vecs.at[3, :hidden].set(params["be2"].reshape(-1))
    vecs = vecs.at[4, :out_pad].set(b3p)

    w1 = params["w1"].astype(matmul_dtype)
    w2 = params["w2"].astype(matmul_dtype)
    w3p = w3p.astype(matmul_dtype)

    args = (x, w1, w2, w3p, vecs)

    def full_spec(a):
        return pl.BlockSpec(a.shape, lambda *_: (0,) * a.ndim)

    # Single block (grid=(1,)): trivially fits VMEM at these sizes.
    # TODO(synk): for training-scale B (>~8K rows) tile the batch with a real
    # grid and a two-pass BN (per-tile sum / sum-of-squares accumulation).
    out_padded = pl.pallas_call(
        _make_discriminator_kernel(B, hidden, out_pad, matmul_dtype),
        out_shape=jax.ShapeDtypeStruct((B, out_pad), jnp.float32),
        grid=(1,),
        in_specs=[full_spec(a) for a in args],
        out_specs=pl.BlockSpec((B, out_pad), lambda *_: (0, 0)),
        compiler_params=pltpu.CompilerParams(
            dimension_semantics=("arbitrary",),
        ),
    )(*args)

    return out_padded[:, :n_class]


def init_params(key, input_size=128, n_class=2, bigger_discrim=True):
    """Deterministic PyTorch-style init.  Weights stored pre-transposed as
    (in_features, out_features).  b1/b2 are kept for the reference even though
    the kernel drops them (they cancel under batch-stat BN)."""
    assert bigger_discrim, "kernel implements the bigger_discrim=True path"
    output_size = 256

    def linear(k, fan_in, fan_out):
        kw, kb = jax.random.split(k)
        bound = 1.0 / jnp.sqrt(jnp.float32(fan_in))
        w = jax.random.uniform(kw, (fan_in, fan_out), jnp.float32, -bound, bound)
        b = jax.random.uniform(kb, (1, fan_out), jnp.float32, -bound, bound)
        return w, b

    k1, k2, k3 = jax.random.split(key, 3)
    w1, b1 = linear(k1, input_size, output_size)
    w2, b2 = linear(k2, output_size, output_size)
    w3, b3 = linear(k3, output_size, n_class)

    return dict(
        w1=w1, b1=b1,
        g1=jnp.ones((1, output_size), jnp.float32),
        be1=jnp.zeros((1, output_size), jnp.float32),
        w2=w2, b2=b2,
        g2=jnp.ones((1, output_size), jnp.float32),
        be2=jnp.zeros((1, output_size), jnp.float32),
        w3=w3, b3=b3,
    )


def discriminator_reference(x, p):
    """Pure-JAX reference mirroring the PyTorch forward (training-mode BN),
    including the b1/b2 biases that the kernel folds away."""
    def bn(h, g, be):
        mean = jnp.mean(h, axis=0, keepdims=True)
        var = jnp.mean((h - mean) ** 2, axis=0, keepdims=True)
        return (h - mean) / jnp.sqrt(var + BN_EPS) * g + be

    h = jnp.maximum(bn(x @ p["w1"] + p["b1"], p["g1"], p["be1"]), 0.0)
    h = jnp.maximum(bn(h @ p["w2"] + p["b2"], p["g2"], p["be2"]), 0.0)
    return h @ p["w3"] + p["b3"]


if __name__ == "__main__":
    key = jax.random.PRNGKey(0)
    k_params, k_x = jax.random.split(key)

    B, INPUT_SIZE, N_CLASS = 8, 128, 2
    params = init_params(k_params, input_size=INPUT_SIZE, n_class=N_CLASS)
    x = jax.random.normal(k_x, (B, INPUT_SIZE), jnp.float32)

    out = discriminator_forward(x, params)          # f32 matmuls: exact semantics
    out = jax.block_until_ready(out)

    ref = discriminator_reference(x, params)
    assert out.shape == (B, N_CLASS)
    assert jnp.allclose(out, ref, atol=1e-4, rtol=1e-4), (
        f"mismatch: max abs err {jnp.max(jnp.abs(out - ref))}"
    )
    print("KERNEL_OK")
</pallas_src>

<mosaic_0001>
module attributes {stable_mosaic.version = 11 : i64} {
  func.func @kernel(%arg0: i32, %arg1: memref<8x128xf32, #tpu.memory_space<vmem>>, %arg2: memref<128x256xf32, #tpu.memory_space<vmem>>, %arg3: memref<256x256xf32, #tpu.memory_space<vmem>>, %arg4: memref<256x128xf32, #tpu.memory_space<vmem>>, %arg5: memref<8x256xf32, #tpu.memory_space<vmem>>, %arg6: memref<8x128xf32, #tpu.memory_space<vmem>>) attributes {dimension_semantics = [#tpu.dimension_semantics<arbitrary>], iteration_bounds = array<i64: 1>, scalar_prefetch = 0 : i64, scratch_operands = 0 : i64, tpu.core_type = #tpu.core_type<tc>, window_params = [{pipeline_mode = #tpu.pipeline_mode<synchronous>, transform_indices = @transform_0, window_bounds = array<i64: 8, 128>}, {pipeline_mode = #tpu.pipeline_mode<synchronous>, transform_indices = @transform_1, window_bounds = array<i64: 128, 256>}, {pipeline_mode = #tpu.pipeline_mode<synchronous>, transform_indices = @transform_2, window_bounds = array<i64: 256, 256>}, {pipeline_mode = #tpu.pipeline_mode<synchronous>, transform_indices = @transform_3, window_bounds = array<i64: 256, 128>}, {pipeline_mode = #tpu.pipeline_mode<synchronous>, transform_indices = @transform_4, window_bounds = array<i64: 8, 256>}, {pipeline_mode = #tpu.pipeline_mode<synchronous>, transform_indices = @transform_5, window_bounds = array<i64: 8, 128>}]} {
    %c0 = arith.constant 0 : index
    %c0_0 = arith.constant 0 : index
    %0 = vector.load %arg5[%c0, %c0_0] : memref<8x256xf32, #tpu.memory_space<vmem>>, vector<1x256xf32>
    %c1 = arith.constant 1 : index
    %c0_1 = arith.constant 0 : index
    %1 = vector.load %arg5[%c1, %c0_1] : memref<8x256xf32, #tpu.memory_space<vmem>>, vector<1x256xf32>
    %c2 = arith.constant 2 : index
    %c0_2 = arith.constant 0 : index
    %2 = vector.load %arg5[%c2, %c0_2] : memref<8x256xf32, #tpu.memory_space<vmem>>, vector<1x256xf32>
    %c3 = arith.constant 3 : index
    %c0_3 = arith.constant 0 : index
    %3 = vector.load %arg5[%c3, %c0_3] : memref<8x256xf32, #tpu.memory_space<vmem>>, vector<1x256xf32>
    %c4 = arith.constant 4 : index
    %c0_4 = arith.constant 0 : index
    %4 = vector.load %arg5[%c4, %c0_4] : memref<8x256xf32, #tpu.memory_space<vmem>>, vector<1x128xf32>
    %c0_5 = arith.constant 0 : index
    %c0_6 = arith.constant 0 : index
    %5 = vector.load %arg1[%c0_5, %c0_6] : memref<8x128xf32, #tpu.memory_space<vmem>>, vector<8x128xf32>
    %c0_7 = arith.constant 0 : index
    %c0_8 = arith.constant 0 : index
    %6 = vector.load %arg2[%c0_7, %c0_8] : memref<128x256xf32, #tpu.memory_space<vmem>>, vector<128x256xf32>
    %cst = arith.constant dense<0.000000e+00> : vector<8x256xf32>
    %7 = tpu.matmul %5, %6, %cst {dimension_numbers = #tpu.dot_dimension_numbers<[1], [0], [0], [1], [0, 0, 1, 1], [], []>} : vector<8x128xf32>, vector<128x256xf32>, vector<8x256xf32> -> vector<8x256xf32>
    %cst_9 = arith.constant dense<0.000000e+00> : vector<256xf32>
    %8 = vector.multi_reduction <add>, %7, %cst_9 [0] : vector<8x256xf32> to vector<256xf32>
    %9 = vector.shape_cast %8 : vector<256xf32> to vector<1x256xf32>
    %cst_10 = arith.constant 1.250000e-01 : f32
    %10 = vector.broadcast %cst_10 : f32 to vector<1x256xf32>
    %11 = arith.mulf %9, %10 : vector<1x256xf32>
    %12 = arith.mulf %7, %7 : vector<8x256xf32>
    %cst_11 = arith.constant dense<0.000000e+00> : vector<256xf32>
    %13 = vector.multi_reduction <add>, %12, %cst_11 [0] : vector<8x256xf32> to vector<256xf32>
    %14 = vector.shape_cast %13 : vector<256xf32> to vector<1x256xf32>
    %cst_12 = arith.constant 1.250000e-01 : f32
    %15 = vector.broadcast %cst_12 : f32 to vector<1x256xf32>
    %16 = arith.mulf %14, %15 : vector<1x256xf32>
    %17 = arith.mulf %11, %11 : vector<1x256xf32>
    %18 = arith.subf %16, %17 : vector<1x256xf32>
    %cst_13 = arith.constant 0.000000e+00 : f32
    %19 = vector.broadcast %cst_13 : f32 to vector<1x256xf32>
    %20 = arith.maximumf %18, %19 : vector<1x256xf32>
    %cst_14 = arith.constant 9.99999974E-6 : f32
    %21 = vector.broadcast %cst_14 : f32 to vector<1x256xf32>
    %22 = arith.addf %20, %21 : vector<1x256xf32>
    %23 = math.rsqrt %22 : vector<1x256xf32>
    %24 = arith.mulf %0, %23 : vector<1x256xf32>
    %25 = arith.mulf %11, %24 : vector<1x256xf32>
    %26 = arith.subf %1, %25 : vector<1x256xf32>
    %27 = vector.broadcast %24 : vector<1x256xf32> to vector<8x256xf32>
    %28 = arith.mulf %7, %27 : vector<8x256xf32>
    %29 = vector.broadcast %26 : vector<1x256xf32> to vector<8x256xf32>
    %30 = arith.addf %28, %29 : vector<8x256xf32>
    %cst_15 = arith.constant 0.000000e+00 : f32
    %31 = vector.broadcast %cst_15 : f32 to vector<8x256xf32>
    %32 = arith.maximumf %30, %31 : vector<8x256xf32>
    %c0_16 = arith.constant 0 : index
    %c0_17 = arith.constant 0 : index
    %33 = vector.load %arg3[%c0_16, %c0_17] : memref<256x256xf32, #tpu.memory_space<vmem>>, vector<256x256xf32>
    %cst_18 = arith.constant dense<0.000000e+00> : vector<8x256xf32>
    %34 = tpu.matmul %32, %33, %cst_18 {dimension_numbers = #tpu.dot_dimension_numbers<[1], [0], [0], [1], [0, 0, 1, 1], [], []>} : vector<8x256xf32>, vector<256x256xf32>, vector<8x256xf32> -> vector<8x256xf32>
    %cst_19 = arith.constant dense<0.000000e+00> : vector<256xf32>
    %35 = vector.multi_reduction <add>, %34, %cst_19 [0] : vector<8x256xf32> to vector<256xf32>
    %36 = vector.shape_cast %35 : vector<256xf32> to vector<1x256xf32>
    %cst_20 = arith.constant 1.250000e-01 : f32
    %37 = vector.broadcast %cst_20 : f32 to vector<1x256xf32>
    %38 = arith.mulf %36, %37 : vector<1x256xf32>
    %39 = arith.mulf %34, %34 : vector<8x256xf32>
    %cst_21 = arith.constant dense<0.000000e+00> : vector<256xf32>
    %40 = vector.multi_reduction <add>, %39, %cst_21 [0] : vector<8x256xf32> to vector<256xf32>
    %41 = vector.shape_cast %40 : vector<256xf32> to vector<1x256xf32>
    %cst_22 = arith.constant 1.250000e-01 : f32
    %42 = vector.broadcast %cst_22 : f32 to vector<1x256xf32>
    %43 = arith.mulf %41, %42 : vector<1x256xf32>
    %44 = arith.mulf %38, %38 : vector<1x256xf32>
    %45 = arith.subf %43, %44 : vector<1x256xf32>
    %cst_23 = arith.constant 0.000000e+00 : f32
    %46 = vector.broadcast %cst_23 : f32 to vector<1x256xf32>
    %47 = arith.maximumf %45, %46 : vector<1x256xf32>
    %cst_24 = arith.constant 9.99999974E-6 : f32
    %48 = vector.broadcast %cst_24 : f32 to vector<1x256xf32>
    %49 = arith.addf %47, %48 : vector<1x256xf32>
    %50 = math.rsqrt %49 : vector<1x256xf32>
    %51 = arith.mulf %2, %50 : vector<1x256xf32>
    %52 = arith.mulf %38, %51 : vector<1x256xf32>
    %53 = arith.subf %3, %52 : vector<1x256xf32>
    %54 = vector.broadcast %51 : vector<1x256xf32> to vector<8x256xf32>
    %55 = arith.mulf %34, %54 : vector<8x256xf32>
    %56 = vector.broadcast %53 : vector<1x256xf32> to vector<8x256xf32>
    %57 = arith.addf %55, %56 : vector<8x256xf32>
    %cst_25 = arith.constant 0.000000e+00 : f32
    %58 = vector.broadcast %cst_25 : f32 to vector<8x256xf32>
    %59 = arith.maximumf %57, %58 : vector<8x256xf32>
    %c0_26 = arith.constant 0 : index
    %c0_27 = arith.constant 0 : index
    %60 = vector.load %arg4[%c0_26, %c0_27] : memref<256x128xf32, #tpu.memory_space<vmem>>, vector<256x128xf32>
    %cst_28 = arith.constant dense<0.000000e+00> : vector<8x128xf32>
    %61 = tpu.matmul %59, %60, %cst_28 {dimension_numbers = #tpu.dot_dimension_numbers<[1], [0], [0], [1], [0, 0, 1, 1], [], []>} : vector<8x256xf32>, vector<256x128xf32>, vector<8x128xf32> -> vector<8x128xf32>
    %62 = vector.broadcast %4 : vector<1x128xf32> to vector<8x128xf32>
    %63 = arith.addf %61, %62 : vector<8x128xf32>
    %c0_29 = arith.constant 0 : index
    %c0_30 = arith.constant 0 : index
    %64 = vector.load %arg6[%c0_29, %c0_30] : memref<8x128xf32, #tpu.memory_space<vmem>>, vector<8x128xf32>
    tpu.vector_store %arg6[%c0_29, %c0_30], %63 {strides = array<i32>} : memref<8x128xf32, #tpu.memory_space<vmem>>, vector<8x128xf32>,
    return
  }
  func.func @transform_0(%arg0: i32) -> (i32, i32) {
    %c0_i32 = arith.constant 0 : i32
    %c0_i32_0 = arith.constant 0 : i32
    %c0_i32_1 = arith.constant 0 : i32
    return %c0_i32, %c0_i32_0 : i32, i32
  }
  func.func @transform_1(%arg0: i32) -> (i32, i32) {
    %c0_i32 = arith.constant 0 : i32
    %c0_i32_0 = arith.constant 0 : i32
    %c0_i32_1 = arith.constant 0 : i32
    return %c0_i32, %c0_i32_0 : i32, i32
  }
  func.func @transform_2(%arg0: i32) -> (i32, i32) {
    %c0_i32 = arith.constant 0 : i32
    %c0_i32_0 = arith.constant 0 : i32
    %c0_i32_1 = arith.constant 0 : i32
    return %c0_i32, %c0_i32_0 : i32, i32
  }
  func.func @transform_3(%arg0: i32) -> (i32, i32) {
    %c0_i32 = arith.constant 0 : i32
    %c0_i32_0 = arith.constant 0 : i32
    %c0_i32_1 = arith.constant 0 : i32
    return %c0_i32, %c0_i32_0 : i32, i32
  }
  func.func @transform_4(%arg0: i32) -> (i32, i32) {
    %c0_i32 = arith.constant 0 : i32
    %c0_i32_0 = arith.constant 0 : i32
    %c0_i32_1 = arith.constant 0 : i32
    return %c0_i32, %c0_i32_0 : i32, i32
  }
  func.func @transform_5(%arg0: i32) -> (i32, i32) {
    %c0_i32 = arith.constant 0 : i32
    %c0_i32_0 = arith.constant 0 : i32
    %c0_i32_1 = arith.constant 0 : i32
    return %c0_i32, %c0_i32_0 : i32, i32
  }
}

</mosaic_0001>

<bundles_post_ra>
// kernel: tpu_custom_call.1
= control target key start
LH: loop header
LB: loop body
LE: loop exit
PB: predicated region body
PF: predicated region fallthrough
CT: control target
= control target key end

     0   :  { %10 = vsyncpa [#allocation3], 0  ;;  %s1140_s0 = inlined_call_operand.hbm [shape: f32[8,128], index: 0, kind: input, shape index: {}]   ;;  %s1141_s1 = inlined_call_operand.hbm [shape: f32[128,256], index: 1, kind: input, shape index: {}]   ;;  %s1142_s2 = inlined_call_operand.hbm [shape: f32[256,256], index: 2, kind: input, shape index: {}]   ;;  %s1143_s3 = inlined_call_operand.hbm [shape: f32[256,128], index: 3, kind: input, shape index: {}]   ;;  %s1144_s4 = inlined_call_operand.hbm [shape: f32[8,256], index: 4, kind: input, shape index: {}]   ;;  %s1145_s5 = inlined_call_operand.hbm [shape: f32[8,128], index: 5, kind: output, shape index: {}]  }
   0x1   :  { %11 = vsyncpa [#allocation6], 0 }
   0x2   :  { %12 = vsyncpa [#allocation9], 0 }
   0x3   :  { %13 = vsyncpa [#allocation4], 0  ;;  %s991_s18 = smov [#allocation5]   ;;  %s851_s22 = scalar_lea.hbm %s1141_s1, 4096 }
   0x4   :  { %s29_s19 = sshll.u32 %s991_s18, 4  ;;  %p852_p0 = scmp.ne.s32.totalorder %s1141_s1, %s851_s22  ;;  %s30_s19 = int_to_ptr.vmem [resolvable:$true] %s29_s19 }
   0x5   :  { %p855_p1 = scmp.lt.u32.totalorder %s851_s22, %s1141_s1 }
   0x7   :  { %p857_p2 = pnand %p855_p1, %p852_p0 }
   0x9   :  { %860 = shalt.err (!%p857_p2)
}
   0xa   :  { %s861_s27 = scalar_lea.vmem %s30_s19, 4096  ;;  %p866_p4 = scmp.lt.s32.totalorder %s30_s19, %s30_s19 }
   0xb   :  { %p862_p3 = scmp.ne.s32.totalorder %s30_s19, %s861_s27  ;;  %p867_p5 = scmp.lt.s32.totalorder %s861_s27, %s861_s27 }
   0xd   :  { %p868_p6 = por %p867_p5, %p866_p4 }
   0xf   :  { %p869_p7 = pnand %p868_p6, %p862_p3 }
  0x11   :  { %872 = shalt.err (!%p869_p7)
}
  0x12   :  { %s992_s28 = smov 256   ;;  %s993_s29 = smov 16  }
  0x13   :  { %35 = dma.hbm_to_vmem [thread:$0]  %s1141_s1, 4096, %s30_s19, [#allocation6], %s992_s28, %s992_s28, %s993_s29  }
  0x14   :  { %s994_s7 = smov [#allocation8]   ;;  %s873_s11 = scalar_lea.hbm %s1143_s3, 4096 }
  0x15   :  { %s53_s8 = sshll.u32 %s994_s7, 4  ;;  %p874_p8 = scmp.ne.s32.totalorder %s1143_s3, %s873_s11  ;;  %s54_s8 = int_to_ptr.vmem [resolvable:$true] %s53_s8 }
  0x16   :  { %p877_p9 = scmp.lt.u32.totalorder %s873_s11, %s1143_s3 }
  0x18   :  { %p879_p10 = pnand %p877_p9, %p874_p8 }
  0x1a   :  { %882 = shalt.err (!%p879_p10)
}
  0x1b   :  { %s883_s16 = scalar_lea.vmem %s54_s8, 4096  ;;  %p888_p12 = scmp.lt.s32.totalorder %s54_s8, %s54_s8 }
  0x1c   :  { %p884_p11 = scmp.ne.s32.totalorder %s54_s8, %s883_s16  ;;  %p889_p13 = scmp.lt.s32.totalorder %s883_s16, %s883_s16 }
  0x1e   :  { %p890_p0 = por %p889_p13, %p888_p12 }
  0x20   :  { %p891_p1 = pnand %p890_p0, %p884_p11 }
  0x22   :  { %894 = shalt.err (!%p891_p1)
}
  0x23   :  { %s995_s1 = smov 128   ;;  %s996_s17 = smov 8  }
  0x24   :  { %59 = dma.hbm_to_vmem [thread:$0]  %s1143_s3, 4096, %s54_s8, [#allocation9], %s995_s1, %s995_s1, %s996_s17  }
  0x25   :  { %s997_s20 = smov [#allocation2]   ;;  %s998_s22 = smov [#allocation7]  }
  0x26   :  { %s20_s21 = sshll.u32 %s997_s20, 4  ;;  %s41_s23 = sshll.u32 %s998_s22, 4  ;;  %s21_s21 = int_to_ptr.vmem [resolvable:$true] %s20_s21  ;;  %s1060_s23 = int_to_ptr.vmem [resolvable:$true] %s41_s23 }
  0x27   :  { %s895_s26 = scalar_lea.hbm %s1140_s0, 128 }
  0x28   :  { %p896_p2 = scmp.ne.s32.totalorder %s1140_s0, %s895_s26  ;;  %p899_p3 = scmp.lt.u32.totalorder %s895_s26, %s1140_s0 }
  0x2a   :  { %p901_p4 = pnand %p899_p3, %p896_p2 }
  0x2c   :  { %904 = shalt.err (!%p901_p4)
}
  0x2d   :  { %s905_s3 = scalar_lea.vmem %s21_s21, 128  ;;  %p910_p6 = scmp.lt.s32.totalorder %s21_s21, %s21_s21 }
  0x2e   :  { %p906_p5 = scmp.ne.s32.totalorder %s21_s21, %s905_s3  ;;  %p911_p7 = scmp.lt.s32.totalorder %s905_s3, %s905_s3 }
  0x30   :  { %p912_p8 = por %p911_p7, %p910_p6 }
  0x32   :  { %p913_p9 = pnand %p912_p8, %p906_p5 }
  0x34   :  { %916 = shalt.err (!%p913_p9)
}
  0x35   :  { %23 = dma.hbm_to_vmem [thread:$0]  %s1140_s0, 128, %s21_s21, [#allocation3]  }
  0x36   :  { %s917_s12 = scalar_lea.hbm %s1142_s2, 8192 }
  0x37   :  { %p918_p10 = scmp.ne.s32.totalorder %s1142_s2, %s917_s12  ;;  %p921_p11 = scmp.lt.u32.totalorder %s917_s12, %s1142_s2 }
  0x39   :  { %p923_p12 = pnand %p921_p11, %p918_p10 }
  0x3b   :  { %926 = shalt.err (!%p923_p12)
}
  0x3c   :  { %s927_s1 = scalar_lea.vmem %s1060_s23, 8192  ;;  %p932_p0 = scmp.lt.s32.totalorder %s1060_s23, %s1060_s23 }
  0x3d   :  { %p928_p13 = scmp.ne.s32.totalorder %s1060_s23, %s927_s1  ;;  %p933_p1 = scmp.lt.s32.totalorder %s927_s1, %s927_s1 }
  0x3f   :  { %p934_p2 = por %p933_p1, %p932_p0 }
  0x41   :  { %p935_p3 = pnand %p934_p2, %p928_p13 }
  0x43   :  { %938 = shalt.err (!%p935_p3)
}
  0x44   :  { %47 = dma.hbm_to_vmem [thread:$0]  %s1142_s2, 8192, %s1060_s23, [#allocation6], %s992_s28, %s992_s28, %s993_s29  }
  0x45   :  { %s999_s18 = smov [#allocation10]   ;;  %s939_s22 = scalar_lea.hbm %s1144_s4, 256 }
  0x46   :  { %s66_s19 = sshll.u32 %s999_s18, 4  ;;  %p940_p4 = scmp.ne.s32.totalorder %s1144_s4, %s939_s22  ;;  %s67_s19 = int_to_ptr.vmem [resolvable:$true] %s66_s19 }
  0x47   :  { %p943_p5 = scmp.lt.u32.totalorder %s939_s22, %s1144_s4 }
  0x49   :  { %p945_p6 = pnand %p943_p5, %p940_p4 }
  0x4b   :  { %948 = shalt.err (!%p945_p6)
}
  0x4c   :  { %s949_s30 = scalar_lea.vmem %s67_s19, 256  ;;  %p954_p8 = scmp.lt.s32.totalorder %s67_s19, %s67_s19 }
  0x4d   :  { %p950_p7 = scmp.ne.s32.totalorder %s67_s19, %s949_s30  ;;  %p955_p9 = scmp.lt.s32.totalorder %s949_s30, %s949_s30 }
  0x4f   :  { %p956_p10 = por %p955_p9, %p954_p8 }
  0x51   :  { %p957_p11 = pnand %p956_p10, %p950_p7 }
  0x53   :  { %960 = shalt.err (!%p957_p11)
}
  0x54   :  { %69 = dma.hbm_to_vmem [thread:$0]  %s1144_s4, 256, %s67_s19, [#allocation9]  }
  0x55   :  { %983 = dma.done.wait [#allocation3], 128  }
  0x56   :  { %984 = vsyncadd [#allocation3], 4294967168 }
  0x57   :  { %985 = dma.done.wait [#allocation6], 12288  }
  0x58   :  { %986 = vsyncadd [#allocation6], 4294955008 }
  0x59   :  { %987 = dma.done.wait [#allocation9], 4352  }
  0x5a   :  { %988 = vsyncadd [#allocation9], 4294962944  ;;  %v1000_v0 = vmov 0.0   ;;  %v95_v1 = vld [vmem:[#allocation5 + $0x8] sm:$0xff]  ;;  %v97_v2 = vld [vmem:[#allocation5 + $0x18] sm:$0xff]  ;;  %s1002_s4 = smov [#allocation11]  }
  0x5b   :  { %190 = vmatprep.mubr.f32.mxu0 %v1000_v0  ;;  %v94_v3 = vld [vmem:[#allocation5] sm:$0xff]  ;;  %v703_v4 = vpack.c.bf16 %v97_v2, %v95_v1  ;;  %v96_v5 = vld [vmem:[#allocation5 + $0x10] sm:$0xff]  ;;  %v99_v6 = vld [vmem:[#allocation5 + $0x28] sm:$0xff]  ;;  %s657_s29 = sshll.u32 %s1002_s4, 4  ;;  %s658_s29 = int_to_ptr.vmem [resolvable:$true] %s657_s29 }
  0x5c   :  { %v101_v7 = vld [vmem:[#allocation5 + $0x38] sm:$0xff]  ;;  %v705_v8 = vpack.c.bf16 %v96_v5, %v94_v3  ;;  %v98_v10 = vld [vmem:[#allocation5 + $0x20] sm:$0xff]  ;;  %v100_v11 = vld [vmem:[#allocation5 + $0x30] sm:$0xff]  ;;  %s961_s23 = scalar_lea.vmem %s658_s29, 128  ;;  %p966_p13 = scmp.lt.s32.totalorder %s658_s29, %s658_s29 }
  0x5d   :  { %v707_v9 = vpack.c.bf16 %v101_v7, %v99_v6  ;;  %v103_v12 = vld [vmem:[#allocation5 + $0x48] sm:$0xff]  ;;  %704 = vmatprep.subr.bf16.mxu0 %v703_v4  ;;  %v105_v13 = vld [vmem:[#allocation5 + $0x58] sm:$0xff]  ;;  %v709_v14 = vpack.c.bf16 %v100_v11, %v98_v10  ;;  %v102_v16 = vld [vmem:[#allocation5 + $0x40] sm:$0xff]  ;;  %p962_p12 = scmp.ne.s32.totalorder %s658_s29, %s961_s23  ;;  %p967_p0 = scmp.lt.s32.totalorder %s961_s23, %s961_s23 }
  0x5e   :  { %706 = vmatpush1.bf16.msra.mxu0 %v705_v8  ;;  %v711_v15 = vpack.c.bf16 %v105_v13, %v103_v12  ;;  %v104_v17 = vld [vmem:[#allocation5 + $0x50] sm:$0xff]  ;;  %v107_v18 = vld [vmem:[#allocation5 + $0x68] sm:$0xff]  ;;  %v109_v19 = vld [vmem:[#allocation5 + $0x78] sm:$0xff] }
  0x5f   :  { %708 = vmatprep.subr.bf16.mxu0 %v707_v9  ;;  %v713_v20 = vpack.c.bf16 %v104_v17, %v102_v16  ;;  %v715_v21 = vpack.c.bf16 %v109_v19, %v107_v18  ;;  %v106_v22 = vld [vmem:[#allocation5 + $0x60] sm:$0xff]  ;;  %v108_v23 = vld [vmem:[#allocation5 + $0x70] sm:$0xff]  ;;  %v111_v24 = vld [vmem:[#allocation5 + $0x88] sm:$0xff]  ;;  %p968_p1 = por %p967_p0, %p966_p13 }
  0x60   :  { %v113_v25 = vld [vmem:[#allocation5 + $0x98] sm:$0xff]  ;;  %v306_v26 = vld [vmem:[#allocation7 + $0x8] sm:$0xff]  ;;  %v305_v28 = vld [vmem:[#allocation7] sm:$0xff]  ;;  %v717_v29 = vpack.c.bf16 %v108_v23, %v106_v22 }
  0x61   :  { %v308_v27 = vld [vmem:[#allocation7 + $0x18] sm:$0xff]  ;;  %v307_v31 = vld [vmem:[#allocation7 + $0x10] sm:$0xff]  ;;  %v719_v32 = vpack.c.bf16 %v113_v25, %v111_v24  ;;  %v110_v33 = vld [vmem:[#allocation5 + $0x80] sm:$0xff]  ;;  %p969_p2 = pnand %p968_p1, %p962_p12 }
  0x62   :  { %710 = vmatpush1.bf16.msra.mxu0 %v709_v14  ;;  %v735_v30 = vpack.c.bf16 %v308_v27, %v306_v26  ;;  %v112_v34 = vld [vmem:[#allocation5 + $0x90] sm:$0xff]  ;;  %v737_v35 = vpack.c.bf16 %v307_v31, %v305_v28  ;;  %v115_v36 = vld [vmem:[#allocation5 + $0xa8] sm:$0xff]  ;;  %v117_v37 = vld [vmem:[#allocation5 + $0xb8] sm:$0xff] }
  0x63   :  { %712 = vmatprep.subr.bf16.mxu0 %v711_v15  ;;  %v721_v38 = vpack.c.bf16 %v112_v34, %v110_v33  ;;  %v723_v39 = vpack.c.bf16 %v117_v37, %v115_v36  ;;  %v114_v40 = vld [vmem:[#allocation5 + $0xa0] sm:$0xff]  ;;  %v116_v41 = vld [vmem:[#allocation5 + $0xb0] sm:$0xff]  ;;  %v119_v42 = vld [vmem:[#allocation5 + $0xc8] sm:$0xff] }
  0x64   :  { %736 = vmatprep.subr.bf16.mxu1 %v735_v30  ;;  %v121_v43 = vld [vmem:[#allocation5 + $0xd8] sm:$0xff]  ;;  %v725_v44 = vpack.c.bf16 %v116_v41, %v114_v40  ;;  %v118_v46 = vld [vmem:[#allocation5 + $0xc0] sm:$0xff]  ;;  %v120_v47 = vld [vmem:[#allocation5 + $0xd0] sm:$0xff] }
  0x65   :  { %738 = vmatpush1.bf16.msra.mxu1 %v737_v35  ;;  %v727_v45 = vpack.c.bf16 %v121_v43, %v119_v42  ;;  %v123_v48 = vld [vmem:[#allocation5 + $0xe8] sm:$0xff]  ;;  %v125_v49 = vld [vmem:[#allocation5 + $0xf8] sm:$0xff]  ;;  %v729_v50 = vpack.c.bf16 %v120_v47, %v118_v46  ;;  %v122_v52 = vld [vmem:[#allocation5 + $0xe0] sm:$0xff] }
  0x66   :  { %714 = vmatpush1.bf16.msra.mxu0 %v713_v20  ;;  %v731_v51 = vpack.c.bf16 %v125_v49, %v123_v48  ;;  %v124_v53 = vld [vmem:[#allocation5 + $0xf0] sm:$0xff]  ;;  %v93_v55 = vld [vmem:[#allocation2] sm:$0xff]  ;;  %v310_v56 = vld [vmem:[#allocation7 + $0x28] sm:$0xff] }
  0x67   :  { %716 = vmatprep.subr.bf16.mxu0 %v715_v21  ;;  %v733_v54 = vpack.c.bf16 %v124_v53, %v122_v52  ;;  %v312_v57 = vld [vmem:[#allocation7 + $0x38] sm:$0xff]  ;;  %v309_v59 = vld [vmem:[#allocation7 + $0x20] sm:$0xff]  ;;  %v311_v60 = vld [vmem:[#allocation7 + $0x30] sm:$0xff] }
  0x68   :  { %v739_v58 = vpack.c.bf16 %v312_v57, %v310_v56  ;;  %v741_v61 = vpack.c.bf16 %v311_v60, %v309_v59  ;;  %v314_v62 = vld [vmem:[#allocation7 + $0x48] sm:$0xff]  ;;  %v316_v63 = vld [vmem:[#allocation7 + $0x58] sm:$0xff]  ;;  %v313_v1 = vld [vmem:[#allocation7 + $0x40] sm:$0xff] }
  0x69   :  { %v743_v0 = vpack.c.bf16 %v316_v63, %v314_v62  ;;  %v315_v2 = vld [vmem:[#allocation7 + $0x50] sm:$0xff]  ;;  %v318_v4 = vld [vmem:[#allocation7 + $0x68] sm:$0xff]  ;;  %v320_v5 = vld [vmem:[#allocation7 + $0x78] sm:$0xff] }
  0x6a   :  { %718 = vmatpush1.bf16.msra.mxu0 %v717_v29  ;;  %740 = vmatprep.subr.bf16.mxu1 %v739_v58  ;;  %v745_v3 = vpack.c.bf16 %v315_v2, %v313_v1  ;;  %v747_v6 = vpack.c.bf16 %v320_v5, %v318_v4  ;;  %v317_v7 = vld [vmem:[#allocation7 + $0x60] sm:$0xff]  ;;  %v319_v8 = vld [vmem:[#allocation7 + $0x70] sm:$0xff]  ;;  %v322_v10 = vld [vmem:[#allocation7 + $0x88] sm:$0xff] }
  0x6b   :  { %720 = vmatprep.subr.bf16.mxu0 %v719_v32  ;;  %742 = vmatpush1.bf16.msra.mxu1 %v741_v61  ;;  %v749_v9 = vpack.c.bf16 %v319_v8, %v317_v7  ;;  %v324_v11 = vld [vmem:[#allocation7 + $0x98] sm:$0xff]  ;;  %v321_v13 = vld [vmem:[#allocation7 + $0x80] sm:$0xff]  ;;  %v323_v14 = vld [vmem:[#allocation7 + $0x90] sm:$0xff] }
  0x6c   :  { %744 = vmatprep.subr.bf16.mxu1 %v743_v0  ;;  %v751_v12 = vpack.c.bf16 %v324_v11, %v322_v10  ;;  %v753_v15 = vpack.c.bf16 %v323_v14, %v321_v13  ;;  %v326_v16 = vld [vmem:[#allocation7 + $0xa8] sm:$0xff]  ;;  %v328_v17 = vld [vmem:[#allocation7 + $0xb8] sm:$0xff]  ;;  %v325_v19 = vld [vmem:[#allocation7 + $0xa0] sm:$0xff] }
  0x6d   :  { %v755_v18 = vpack.c.bf16 %v328_v17, %v326_v16  ;;  %v327_v20 = vld [vmem:[#allocation7 + $0xb0] sm:$0xff]  ;;  %v330_v22 = vld [vmem:[#allocation7 + $0xc8] sm:$0xff]  ;;  %v332_v23 = vld [vmem:[#allocation7 + $0xd8] sm:$0xff] }
  0x6e   :  { %722 = vmatpush1.bf16.msra.mxu0 %v721_v38  ;;  %v757_v21 = vpack.c.bf16 %v327_v20, %v325_v19  ;;  %v759_v24 = vpack.c.bf16 %v332_v23, %v330_v22  ;;  %v329_v25 = vld [vmem:[#allocation7 + $0xc0] sm:$0xff]  ;;  %v331_v26 = vld [vmem:[#allocation7 + $0xd0] sm:$0xff]  ;;  %v334_v28 = vld [vmem:[#allocation7 + $0xe8] sm:$0xff] }
  0x6f   :  { %724 = vmatprep.subr.bf16.mxu0 %v723_v39  ;;  %746 = vmatpush1.bf16.msra.mxu1 %v745_v3  ;;  %v761_v27 = vpack.c.bf16 %v331_v26, %v329_v25  ;;  %v336_v29 = vld [vmem:[#allocation7 + $0xf8] sm:$0xff]  ;;  %v333_v30 = vld [vmem:[#allocation7 + $0xe0] sm:$0xff]  ;;  %v335_v32 = vld [vmem:[#allocation7 + $0xf0] sm:$0xff] }
  0x70   :  { %748 = vmatprep.subr.bf16.mxu1 %v747_v6  ;;  %v763_v31 = vpack.c.bf16 %v336_v29, %v334_v28  ;;  %v338_v33 = vld [vmem:[#allocation7 + $0x108] sm:$0xff]  ;;  %v340_v34 = vld [vmem:[#allocation7 + $0x118] sm:$0xff]  ;;  %v765_v35 = vpack.c.bf16 %v335_v32, %v333_v30  ;;  %v337_v37 = vld [vmem:[#allocation7 + $0x100] sm:$0xff] }
  0x71   :  { %v767_v36 = vpack.c.bf16 %v340_v34, %v338_v33  ;;  %v339_v38 = vld [vmem:[#allocation7 + $0x110] sm:$0xff]  ;;  %v342_v39 = vld [vmem:[#allocation7 + $0x128] sm:$0xff]  ;;  %v344_v40 = vld [vmem:[#allocation7 + $0x138] sm:$0xff] }
  0x72   :  { %726 = vmatpush1.bf16.msra.mxu0 %v725_v44  ;;  %v769_v41 = vpack.c.bf16 %v339_v38, %v337_v37  ;;  %v771_v42 = vpack.c.bf16 %v344_v40, %v342_v39  ;;  %v341_v43 = vld [vmem:[#allocation7 + $0x120] sm:$0xff]  ;;  %v343_v44 = vld [vmem:[#allocation7 + $0x130] sm:$0xff]  ;;  %v348_v46 = vld [vmem:[#allocation7 + $0x158] sm:$0xff] }
  0x73   :  { %728 = vmatprep.subr.bf16.mxu0 %v727_v45  ;;  %750 = vmatpush1.bf16.msra.mxu1 %v749_v9  ;;  %v346_v45 = vld [vmem:[#allocation7 + $0x148] sm:$0xff]  ;;  %v773_v47 = vpack.c.bf16 %v343_v44, %v341_v43  ;;  %v345_v49 = vld [vmem:[#allocation7 + $0x140] sm:$0xff]  ;;  %v352_v52 = vld [vmem:[#allocation7 + $0x178] sm:$0xff] }
  0x74   :  { %752 = vmatprep.subr.bf16.mxu1 %v751_v12  ;;  %v775_v48 = vpack.c.bf16 %v348_v46, %v346_v45  ;;  %v351_v56 = vld [vmem:[#allocation7 + $0x170] sm:$0xff]  ;;  %v354_v57 = vld [vmem:[#allocation7 + $0x188] sm:$0xff]  ;;  %v356_v58 = vld [vmem:[#allocation7 + $0x198] sm:$0xff] }
  0x75   :  { %v783_v60 = vpack.c.bf16 %v356_v58, %v354_v57  ;;  %v353_v61 = vld [vmem:[#allocation7 + $0x180] sm:$0xff]  ;;  %v355_v62 = vld [vmem:[#allocation7 + $0x190] sm:$0xff]  ;;  %v358_v63 = vld [vmem:[#allocation7 + $0x1a8] sm:$0xff]  ;;  %v1001_v58 = vmov 1966171168  }
  0x76   :  { %730 = vmatpush1.bf16.msra.mxu0 %v729_v50  ;;  %v347_v50 = vld [vmem:[#allocation7 + $0x150] sm:$0xff]  ;;  %v360_v0 = vld [vmem:[#allocation7 + $0x1b8] sm:$0xff]  ;;  %v785_v1 = vpack.c.bf16 %v355_v62, %v353_v61  ;;  %v357_v3 = vld [vmem:[#allocation7 + $0x1a0] sm:$0xff] }
  0x77   :  { %732 = vmatprep.subr.bf16.mxu0 %v731_v51  ;;  %754 = vmatpush1.bf16.msra.mxu1 %v753_v15  ;;  %v350_v51 = vld [vmem:[#allocation7 + $0x168] sm:$0xff]  ;;  %v777_v53 = vpack.c.bf16 %v347_v50, %v345_v49  ;;  %v787_v2 = vpack.c.bf16 %v360_v0, %v358_v63  ;;  %v359_v4 = vld [vmem:[#allocation7 + $0x1b0] sm:$0xff]  ;;  %v364_v6 = vld [vmem:[#allocation7 + $0x1d8] sm:$0xff] }
  0x78   :  { %756 = vmatprep.subr.bf16.mxu1 %v755_v18  ;;  %v362_v5 = vld [vmem:[#allocation7 + $0x1c8] sm:$0xff]  ;;  %v789_v7 = vpack.c.bf16 %v359_v4, %v357_v3  ;;  %v361_v9 = vld [vmem:[#allocation7 + $0x1c0] sm:$0xff]  ;;  %v363_v10 = vld [vmem:[#allocation7 + $0x1d0] sm:$0xff] }
  0x79   :  { %v791_v8 = vpack.c.bf16 %v364_v6, %v362_v5  ;;  %v366_v11 = vld [vmem:[#allocation7 + $0x1e8] sm:$0xff]  ;;  %v368_v12 = vld [vmem:[#allocation7 + $0x1f8] sm:$0xff]  ;;  %v793_v13 = vpack.c.bf16 %v363_v10, %v361_v9  ;;  %v365_v15 = vld [vmem:[#allocation7 + $0x1e0] sm:$0xff] }
  0x7a   :  { %734 = vmatpush1.bf16.msra.mxu0 %v733_v54  ;;  %v779_v54 = vpack.c.bf16 %v352_v52, %v350_v51  ;;  %v795_v14 = vpack.c.bf16 %v368_v12, %v366_v11  ;;  %v367_v16 = vld [vmem:[#allocation7 + $0x1f0] sm:$0xff]  ;;  %v85_v4 = vld [vmem:[#allocation10] ss:$8 sm:$0x3] }
  0x7b   :  { %758 = vmatpush1.bf16.msra.mxu1 %v757_v21  ;;  %v797_v17 = vpack.c.bf16 %v367_v16, %v365_v15 }
  0x7c   :  { %760 = vmatprep.subr.bf16.mxu1 %v759_v24 }
  0x7d   :  { %191 = vmatmul.mubr.f32.vlgmr.msra.gmra.mrb[0].mxu0 %v93_v55  ;;  %v349_v55 = vld [vmem:[#allocation7 + $0x160] sm:$0xff] }
  0x7e   :  { %v781_v59 = vpack.c.bf16 %v351_v56, %v349_v55 }
  0x7f   :  { %762 = vmatpush1.bf16.msra.mxu1 %v761_v27 }
  0x80   :  { %764 = vmatprep.subr.bf16.mxu1 %v763_v31 }
  0x83   :  { %766 = vmatpush1.bf16.msra.mxu1 %v765_v35 }
  0x84   :  { %768 = vmatprep.subr.bf16.mxu1 %v767_v36 }
  0x87   :  { %770 = vmatpush1.bf16.msra.mxu1 %v769_v41 }
  0x88   :  { %772 = vmatprep.subr.bf16.mxu1 %v771_v42 }
  0x8b   :  { %774 = vmatpush1.bf16.msra.mxu1 %v773_v47 }
  0x8c   :  { %776 = vmatprep.subr.bf16.mxu1 %v775_v48 }
  0x8f   :  { %778 = vmatpush1.bf16.msra.mxu1 %v777_v53 }
  0x90   :  { %780 = vmatprep.subr.bf16.mxu1 %v779_v54 }
  0x93   :  { %782 = vmatpush1.bf16.msra.mxu1 %v781_v59  ;;  %v241_v59 = vunpack.c.l.s4 %v1001_v58 }
  0x94   :  { %784 = vmatprep.subr.bf16.mxu1 %v783_v60  ;;  %v243_v60 = vlaneseq }
  0x95   :  { %v242_v61 = vunpack.c.0.s8 %v241_v59  ;;  %v558_v59 = vld [vmem:[#allocation8 + $0x50] sm:$0xff] }
  0x96   :  { %v244_v62 = vshrl.u32 %v243_v60, 7  ;;  %v559_v60 = vld [vmem:[#allocation8 + $0x58] sm:$0xff] }
  0x97   :  { %786 = vmatpush1.bf16.msra.mxu1 %v785_v1 }
  0x98   :  { %788 = vmatprep.subr.bf16.mxu1 %v787_v2  ;;  %v1106_v0 = vsub.s32 %v242_v61, %v244_v62  ;;  %v1110_v6 = vsub.s32 0, %v244_v62  ;;  %v821_v61 = vpack.c.bf16 %v559_v60, %v558_v59 }
  0x9b   :  { %790 = vmatpush1.bf16.msra.mxu1 %v789_v7  ;;  %v1112_v7 = vsub.s32 1, %v244_v62  ;;  %v576_v62 = vld [vmem:[#allocation8 + $0xe0] sm:$0xff] }
  0x9c   :  { %792 = vmatprep.subr.bf16.mxu1 %v791_v8 }
  0x9f   :  { %794 = vmatpush1.bf16.msra.mxu1 %v793_v13 }
  0xa0   :  { %796 = vmatprep.subr.bf16.mxu1 %v795_v14 }
  0xa3   :  { %798 = vmatpush1.bf16.msra.mxu1 %v797_v17  ;;  %v87_v17 = vld [vmem:[#allocation10 + $0x1] ss:$8 sm:$0x3] }
 0x150   :  { %v192_v18 = vpop.f32.mrb[0].mxu0 }
 0x151   :  { %v197_v19 = vrot.slane %v192_v18, 4  ;;  %v211_v20 = vmul.f32 %v192_v18, %v192_v18  ;;  %v194_v21 = vpop.f32.mrb[1].mxu0 }
 0x152   :  { %v203_v22 = vrot.slane %v194_v21, 4  ;;  %v212_v23 = vmul.f32 %v194_v21, %v194_v21 }
 0x153   :  { %v198_v24 = vadd.f32 %v197_v19, %v192_v18  ;;  %v213_v25 = vrot.slane %v211_v20, 4 }
 0x154   :  { %v204_v26 = vadd.f32 %v203_v22, %v194_v21  ;;  %v219_v27 = vrot.slane %v212_v23, 4 }
 0x155   :  { %v199_v28 = vrot.slane %v198_v24, 2  ;;  %v214_v29 = vadd.f32 %v213_v25, %v211_v20 }
 0x156   :  { %v205_v30 = vrot.slane %v204_v26, 2  ;;  %v220_v31 = vadd.f32 %v219_v27, %v212_v23 }
 0x157   :  { %v200_v32 = vadd.f32 %v199_v28, %v198_v24  ;;  %v215_v33 = vrot.slane %v214_v29, 2  ;;  %v564_v28 = vld [vmem:[#allocation8 + $0x80] sm:$0xff] }
 0x158   :  { %v206_v34 = vadd.f32 %v205_v30, %v204_v26  ;;  %v221_v35 = vrot.slane %v220_v31, 2  ;;  %v549_v30 = vld [vmem:[#allocation8 + $0x8] sm:$0xff] }
 0x159   :  { %v201_v36 = vrot.slane %v200_v32, 1  ;;  %v216_v37 = vadd.f32 %v215_v33, %v214_v29  ;;  %v548_v29 = vld [vmem:[#allocation8] sm:$0xff]  ;;  %v567_v33 = vld [vmem:[#allocation8 + $0x98] sm:$0xff] }
 0x15a   :  { %v207_v38 = vrot.slane %v206_v34, 1  ;;  %v222_v39 = vadd.f32 %v221_v35, %v220_v31  ;;  %v801_v31 = vpack.c.bf16 %v549_v30, %v548_v29  ;;  %v550_v35 = vld [vmem:[#allocation8 + $0x10] sm:$0xff] }
 0x15b   :  { %v202_v40 = vadd.f32 %v201_v36, %v200_v32  ;;  %v217_v41 = vrot.slane %v216_v37, 1  ;;  %v566_v32 = vld [vmem:[#allocation8 + $0x90] sm:$0xff]  ;;  %v551_v36 = vld [vmem:[#allocation8 + $0x18] sm:$0xff] }
 0x15c   :  { %v223_v42 = vrot.slane %v222_v39, 1  ;;  %v208_v43 = vadd.f32 %v207_v38, %v206_v34  ;;  %v803_v34 = vpack.c.bf16 %v567_v33, %v566_v32  ;;  %v568_v38 = vld [vmem:[#allocation8 + $0xa0] sm:$0xff] }
 0x15d   :  { %v209_v44 = vmul.f32 0.125, %v202_v40  ;;  %v218_v45 = vadd.f32 %v217_v41, %v216_v37  ;;  %v805_v37 = vpack.c.bf16 %v551_v36, %v550_v35  ;;  %v552_v41 = vld [vmem:[#allocation8 + $0x20] sm:$0xff] }
 0x15e   :  { %v224_v46 = vadd.f32 %v223_v42, %v222_v39  ;;  %v210_v47 = vmul.f32 0.125, %v208_v43  ;;  %v569_v39 = vld [vmem:[#allocation8 + $0xa8] sm:$0xff] }
 0x15f   :  { %v225_v48 = vmul.f32 0.125, %v218_v45  ;;  %v227_v49 = vmul.f32 %v209_v44, %v209_v44  ;;  %v807_v40 = vpack.c.bf16 %v569_v39, %v568_v38  ;;  %v553_v42 = vld [vmem:[#allocation8 + $0x28] sm:$0xff]  ;;  %v571_v45 = vld [vmem:[#allocation8 + $0xb8] sm:$0xff] }
 0x160   :  { %v226_v50 = vmul.f32 0.125, %v224_v46  ;;  %v228_v51 = vmul.f32 %v210_v47, %v210_v47  ;;  %v809_v43 = vpack.c.bf16 %v553_v42, %v552_v41 }
 0x161   :  { %v229_v52 = vsub.f32 %v225_v48, %v227_v49  ;;  %v555_v48 = vld [vmem:[#allocation8 + $0x38] sm:$0xff] }
 0x162   :  { %v230_v53 = vsub.f32 %v226_v50, %v228_v51  ;;  %v572_v50 = vld [vmem:[#allocation8 + $0xc0] sm:$0xff]  ;;  %v573_v51 = vld [vmem:[#allocation8 + $0xc8] sm:$0xff] }
 0x163   :  { %v231_v54 = vmax.f32 %v229_v52, 0.0  ;;  %v815_v52 = vpack.c.bf16 %v573_v51, %v572_v50 }
 0x164   :  { %v232_v55 = vmax.f32 %v230_v53, 0.0  ;;  %v556_v53 = vld [vmem:[#allocation8 + $0x40] sm:$0xff] }
 0x165   :  { %v233_v56 = vadd.f32 1e-05, %v231_v54  ;;  %v557_v54 = vld [vmem:[#allocation8 + $0x48] sm:$0xff] }
 0x166   :  { %v234_v57 = vadd.f32 1e-05, %v232_v55  ;;  %v817_v55 = vpack.c.bf16 %v557_v54, %v556_v53 }
 0x167   :  { %843 = vrsqrt.f32 %v233_v56  ;;  %v574_v56 = vld [vmem:[#allocation8 + $0xd0] sm:$0xff] }
 0x168   :  { %845 = vrsqrt.f32 %v234_v57  ;;  %v575_v57 = vld [vmem:[#allocation8 + $0xd8] sm:$0xff] }
 0x169   :  { %v819_v58 = vpack.c.bf16 %v575_v57, %v574_v56  ;;  %v89_v57 = vld [vmem:[#allocation10 + $0x2] ss:$8 sm:$0x3] }
 0x171   :  { %v844_v63 = vpop.eup %843 }
 0x172   :  { %v846_v1 = vpop.eup %845 }
 0x173   :  { %v239_v2 = vcombine.low %v844_v63, %v846_v1  ;;  %v577_v63 = vld [vmem:[#allocation8 + $0xe8] sm:$0xff]  ;;  %v560_v1 = vld [vmem:[#allocation8 + $0x60] sm:$0xff] }
 0x175   :  { %v246_v3 = vrot.slane %v239_v2, %v1106_v0  ;;  %v823_v2 = vpack.c.bf16 %v577_v63, %v576_v62 }
 0x177   :  { %v253_v5 = vrot.slane %v246_v3, %v1106_v0  ;;  %v561_v3 = vld [vmem:[#allocation8 + $0x68] sm:$0xff] }
 0x179   :  { %v255_v8 = vmul.f32 %v253_v5, %v85_v4  ;;  %v578_v4 = vld [vmem:[#allocation8 + $0xf0] sm:$0xff]  ;;  %v579_v5 = vld [vmem:[#allocation8 + $0xf8] sm:$0xff] }
 0x17b   :  { %v260_v9 = vrot.slane %v255_v8, %v1110_v6  ;;  %v264_v10 = vrot.slane %v255_v8, %v1112_v7  ;;  %v825_v8 = vpack.c.bf16 %v561_v3, %v560_v1 }
 0x17d   :  { %v267_v11 = vmul.f32 %v260_v9, %v209_v44  ;;  %v268_v12 = vmul.f32 %v264_v10, %v210_v47  ;;  %v289_v13 = vmul.f32 %v264_v10, %v194_v21  ;;  %v288_v14 = vmul.f32 %v260_v9, %v192_v18  ;;  %v565_v21 = vld [vmem:[#allocation8 + $0x88] sm:$0xff]  ;;  %v570_v44 = vld [vmem:[#allocation8 + $0xb0] sm:$0xff] }
 0x17e   :  { %v799_v18 = vpack.c.bf16 %v565_v21, %v564_v28  ;;  %v811_v46 = vpack.c.bf16 %v571_v45, %v570_v44  ;;  %v554_v47 = vld [vmem:[#allocation8 + $0x30] sm:$0xff]  ;;  %v827_v9 = vpack.c.bf16 %v579_v5, %v578_v4  ;;  %v91_v5 = vld [vmem:[#allocation10 + $0x3] ss:$8 sm:$0x3] }
 0x17f   :  { %v271_v15 = vcombine.low %v267_v11, %v268_v12  ;;  %v813_v49 = vpack.c.bf16 %v555_v48, %v554_v47  ;;  %v562_v10 = vld [vmem:[#allocation8 + $0x70] sm:$0xff]  ;;  %v563_v11 = vld [vmem:[#allocation8 + $0x78] sm:$0xff] }
 0x180   :  { %800 = vmatprep.subr.bf16.mxu0 %v799_v18  ;;  %v829_v12 = vpack.c.bf16 %v563_v11, %v562_v10 }
 0x181   :  { %v278_v16 = vrot.slane %v271_v15, %v1106_v0  ;;  %802 = vmatpush3.bf16.msra.mxu0 %v801_v31 }
 0x182   :  { %804 = vmatprep.subr.bf16.mxu0 %v803_v34 }
 0x183   :  { %v285_v19 = vrot.slane %v278_v16, %v1106_v0 }
 0x185   :  { %v287_v20 = vsub.f32 %v87_v17, %v285_v19  ;;  %806 = vmatpush3.bf16.msra.mxu0 %v805_v37 }
 0x186   :  { %808 = vmatprep.subr.bf16.mxu0 %v807_v40 }
 0x187   :  { %v298_v22 = vrot.slane %v287_v20, %v1112_v7  ;;  %v294_v23 = vrot.slane %v287_v20, %v1110_v6 }
 0x189   :  { %v302_v24 = vadd.f32 %v298_v22, %v289_v13  ;;  %v301_v25 = vadd.f32 %v294_v23, %v288_v14  ;;  %810 = vmatpush3.bf16.msra.mxu0 %v809_v43 }
 0x18a   :  { %812 = vmatprep.subr.bf16.mxu0 %v811_v46 }
 0x18b   :  { %v304_v26 = vmax.f32 %v302_v24, 0.0  ;;  %v303_v27 = vmax.f32 %v301_v25, 0.0 }
 0x18d   :  { %433 = vmatprep.mubr.f32.mxu1 %v304_v26  ;;  %814 = vmatpush3.bf16.msra.mxu0 %v813_v49 }
 0x18e   :  { %434 = vmatmul.mubr.f32.vlgmr.msra.gmra.mrb[0].mxu1 %v303_v27  ;;  %816 = vmatprep.subr.bf16.mxu0 %v815_v52 }
 0x191   :  { %818 = vmatpush3.bf16.msra.mxu0 %v817_v55 }
 0x192   :  { %820 = vmatprep.subr.bf16.mxu0 %v819_v58 }
 0x195   :  { %822 = vmatpush3.bf16.msra.mxu0 %v821_v61 }
 0x196   :  { %824 = vmatprep.subr.bf16.mxu0 %v823_v2 }
 0x199   :  { %826 = vmatpush3.bf16.msra.mxu0 %v825_v8 }
 0x19a   :  { %828 = vmatprep.subr.bf16.mxu0 %v827_v9 }
 0x19d   :  { %830 = vmatpush3.bf16.msra.mxu0 %v829_v12 }
 0x261   :  { %v435_v13 = vpop.f32.mrb[0].mxu1 }
 0x262   :  { %v440_v14 = vrot.slane %v435_v13, 4  ;;  %v454_v15 = vmul.f32 %v435_v13, %v435_v13  ;;  %v437_v16 = vpop.f32.mrb[1].mxu1 }
 0x263   :  { %v446_v17 = vrot.slane %v437_v16, 4  ;;  %v455_v19 = vmul.f32 %v437_v16, %v437_v16 }
 0x264   :  { %v441_v20 = vadd.f32 %v440_v14, %v435_v13  ;;  %v456_v22 = vrot.slane %v454_v15, 4 }
 0x265   :  { %v447_v23 = vadd.f32 %v446_v17, %v437_v16  ;;  %v462_v24 = vrot.slane %v455_v19, 4 }
 0x266   :  { %v442_v25 = vrot.slane %v441_v20, 2  ;;  %v457_v26 = vadd.f32 %v456_v22, %v454_v15 }
 0x267   :  { %v448_v27 = vrot.slane %v447_v23, 2  ;;  %v463_v28 = vadd.f32 %v462_v24, %v455_v19 }
 0x268   :  { %v443_v21 = vadd.f32 %v442_v25, %v441_v20  ;;  %v458_v18 = vrot.slane %v457_v26, 2 }
 0x269   :  { %v449_v29 = vadd.f32 %v448_v27, %v447_v23  ;;  %v464_v30 = vrot.slane %v463_v28, 2 }
 0x26a   :  { %v444_v31 = vrot.slane %v443_v21, 1  ;;  %v459_v32 = vadd.f32 %v458_v18, %v457_v26 }
 0x26b   :  { %v450_v33 = vrot.slane %v449_v29, 1  ;;  %v465_v34 = vadd.f32 %v464_v30, %v463_v28 }
 0x26c   :  { %v445_v35 = vadd.f32 %v444_v31, %v443_v21  ;;  %v460_v36 = vrot.slane %v459_v32, 1 }
 0x26d   :  { %v451_v37 = vadd.f32 %v450_v33, %v449_v29  ;;  %v466_v38 = vrot.slane %v465_v34, 1 }
 0x26e   :  { %v452_v39 = vmul.f32 0.125, %v445_v35  ;;  %v461_v40 = vadd.f32 %v460_v36, %v459_v32 }
 0x26f   :  { %v453_v41 = vmul.f32 0.125, %v451_v37  ;;  %v467_v42 = vadd.f32 %v466_v38, %v465_v34 }
 0x270   :  { %v468_v43 = vmul.f32 0.125, %v461_v40  ;;  %v470_v44 = vmul.f32 %v452_v39, %v452_v39 }
 0x271   :  { %v469_v45 = vmul.f32 0.125, %v467_v42  ;;  %v471_v46 = vmul.f32 %v453_v41, %v453_v41 }
 0x272   :  { %v472_v47 = vsub.f32 %v468_v43, %v470_v44 }
 0x273   :  { %v473_v48 = vsub.f32 %v469_v45, %v471_v46 }
 0x274   :  { %v474_v49 = vmax.f32 %v472_v47, 0.0 }
 0x275   :  { %v475_v50 = vmax.f32 %v473_v48, 0.0 }
 0x276   :  { %v476_v51 = vadd.f32 1e-05, %v474_v49 }
 0x277   :  { %v477_v52 = vadd.f32 1e-05, %v475_v50 }
 0x278   :  { %847 = vrsqrt.f32 %v476_v51 }
 0x279   :  { %849 = vrsqrt.f32 %v477_v52 }
 0x282   :  { %v848_v53 = vpop.eup %847 }
 0x283   :  { %v850_v54 = vpop.eup %849 }
 0x284   :  { %v482_v55 = vcombine.low %v848_v53, %v850_v54 }
 0x286   :  { %v489_v56 = vrot.slane %v482_v55, %v1106_v0 }
 0x288   :  { %v496_v58 = vrot.slane %v489_v56, %v1106_v0 }
 0x28a   :  { %v498_v59 = vmul.f32 %v496_v58, %v89_v57 }
 0x28c   :  { %v503_v60 = vrot.slane %v498_v59, %v1110_v6  ;;  %v507_v61 = vrot.slane %v498_v59, %v1112_v7 }
 0x28e   :  { %v510_v62 = vmul.f32 %v503_v60, %v452_v39  ;;  %v511_v63 = vmul.f32 %v507_v61, %v453_v41  ;;  %v532_v1 = vmul.f32 %v507_v61, %v437_v16  ;;  %v531_v2 = vmul.f32 %v503_v60, %v435_v13  ;;  %v92_v16 = vld [vmem:[#allocation10 + $0x4] ss:$0 sm:$0xff] }
 0x290   :  { %v514_v3 = vcombine.low %v510_v62, %v511_v63 }
 0x292   :  { %v521_v4 = vrot.slane %v514_v3, %v1106_v0 }
 0x294   :  { %v528_v8 = vrot.slane %v521_v4, %v1106_v0 }
 0x296   :  { %v530_v9 = vsub.f32 %v91_v5, %v528_v8 }
 0x298   :  { %v541_v10 = vrot.slane %v530_v9, %v1112_v7  ;;  %v537_v11 = vrot.slane %v530_v9, %v1110_v6 }
 0x29a   :  { %v545_v12 = vadd.f32 %v541_v10, %v532_v1  ;;  %v544_v14 = vadd.f32 %v537_v11, %v531_v2 }
 0x29c   :  { %v547_v15 = vmax.f32 %v545_v12, 0.0  ;;  %v546_v17 = vmax.f32 %v544_v14, 0.0 }
 0x29e   :  { %644 = vmatprep.mubr.f32.mxu0 %v547_v15 }
 0x29f   :  { %645 = vmatmul.mubr.f32.vlgmr.msra.gmra.mrb[2].mxu0 %v546_v17 }
 0x372   :  { %v700_v19 = vpop.f32.mrb[2].mxu0 }
 0x373   :  { %v701_v13 = vpop.f32.mrb[3].mxu0 }
 0x374   :  { %v702_v20 = vadd.f32 %v701_v13, %v700_v19 }
 0x376   :  { %v647_v22 = vadd.f32 %v702_v20, %v92_v16 }
 0x378   :  { %650 = vst [vmem:[#allocation11] sm:$0xff] %v647_v22 }
 0x379   :  { %972 = shalt.err (!%p969_p2)
}
 0x37a   :  { %s973_s3 = scalar_lea.hbm %s1145_s5, 128 }
 0x37b   :  { %p974_p3 = scmp.ne.s32.totalorder %s1145_s5, %s973_s3  ;;  %p977_p4 = scmp.lt.u32.totalorder %s973_s3, %s1145_s5 }
 0x37d   :  { %p979_p5 = pnand %p977_p4, %p974_p3 }
 0x37f   :  { %982 = shalt.err (!%p979_p5)
}
 0x380   :  { %660 = dma.vmem_to_hbm [thread:$0]  %s658_s29, 128, %s1145_s5, [#allocation4]  }
 0x381   :  { %989 = dma.done.wait [#allocation4], 128  }
 0x382   :  { %990 = vsyncadd [#allocation4], 4294967168 }
 0x383   :  { %664 = vsyncpa [#allocation3], 1 }
 0x384   :  { %665 = vsyncpa [#allocation6], 1 }
 0x385   :  { %666 = vsyncpa [#allocation9], 1 }
 0x386   :  { %667 = vsyncpa [#allocation4], 1 }

</bundles_post_ra>
